<compile_context>
chip_gen: v6e
topology: v6e:2x2x1
jax: 0.10.0
libtpu: 0.0.40
codegen_flags: <defaults>
</compile_context>

<pallas_src>
import functools

import jax
import jax.numpy as jnp
from jax.experimental import pallas as pl
from jax.experimental.pallas import tpu as pltpu


def _bce_perm_kernel(scale_ref,                  # (1, 1)   f32   SMEM
                     r_ref, c_ref,               # (1, NM)  int32 VMEM (constant)
                     pred_ns_ref, gt_ns_ref,     # (Bt, 1)  int32 VMEM
                     pred_ref, gt_ref, w_ref,    # (Bt, NM)       VMEM (HBM dtypes)
                     out_ref,                    # (1, 1, 128) f32 resident partial
                     *, binary_gt):
    @pl.when(pl.program_id(1) == 0)
    def _():
        out_ref[...] = jnp.zeros_like(out_ref)

    nm = pred_ref.shape[-1]

    # Valid-region mask from precomputed flattened row/col indices; broadcasts
    # (1, NM) x (Bt, 1) -> (Bt, NM).  No per-step iota or integer div/mod.
    n_rows = pred_ns_ref[...] + 1                # (Bt, 1)
    n_cols = gt_ns_ref[...] + 1
    mask = (r_ref[...] < n_rows) & (c_ref[...] < n_cols)

    scale = scale_ref[0, 0]
    p = pred_ref[...].astype(jnp.float32) * scale
    g = gt_ref[...].astype(jnp.float32)
    w = w_ref[...].astype(jnp.float32)

    # torch.nn.functional.binary_cross_entropy clamps the log terms at -100.
    if binary_gt:
        # gt is exactly 0/1: one clamped log per element (half the EUP work).
        q = jnp.where(g != 0.0, p, 1.0 - p)
        elem = -w * jnp.maximum(jnp.log(q), -100.0)
    else:
        log_p = jnp.maximum(jnp.log(p), -100.0)
        log_1mp = jnp.maximum(jnp.log(1.0 - p), -100.0)
        elem = -w * (g * log_p + (1.0 - g) * log_1mp)

    # Mask AFTER the log math so inf/NaN from invalid rows/cols never reach
    # the accumulator (there are no padded HBM copies backing those entries).
    elem = jnp.where(mask, elem, 0.0)

    if nm % 128 == 0:
        # Fold aligned 128-lane chunks at full (Bt, 128) height first, then a
        # single sublane reduce per grid step.
        folded = elem[:, 0:128]
        for chunk in range(1, nm // 128):
            folded = folded + elem[:, chunk * 128:(chunk + 1) * 128]
        partial = jnp.sum(folded, axis=0, keepdims=True)          # (1, 128)
    else:
        # Rare layout (N*M not a multiple of 128): reduce to a scalar, lane 0.
        total = jnp.sum(elem)
        lane = jax.lax.broadcasted_iota(jnp.int32, (1, 128), 1)
        partial = jnp.where(lane == 0, total, jnp.float32(0.0))

    out_ref[...] = out_ref[...] + partial.reshape(1, 1, 128)


def _pick_bt(batch, max_bt, step):
    """Choose the batch tile.

    Prefers a tile that (a) divides `batch` exactly (no padded HBM copies of
    the big tensors), (b) is a multiple of `step` sublanes or the full batch,
    (c) fits the VMEM budget, and (d) yields >= 4 grid steps so the BlockSpec
    pipeline overlaps DMA with compute.  Returns (Bt, need_pad).
    """
    max_bt = max(1, max_bt)
    candidates = [d for d in range(step, batch, step)
                  if batch % d == 0 and d <= max_bt]
    if batch <= max_bt:
        candidates.append(batch)                 # single-tile fallback
    if not candidates:
        # Rare: nothing padding-free fits the budget -> pad the batch.
        return max(step, (max_bt // step) * step), True
    deep = [d for d in candidates if batch // d >= 4]
    return (max(deep) if deep else max(candidates)), False


def cross_entropy_perm_loss(pred_perm, gt_perm, pred_ns, gt_ns, weights,
                            binary_gt=None):
    """Pallas equivalent of CrossEntropyLoss.forward; returns an f32 scalar.

    pred_perm, gt_perm, weights: (B, N, M), streamed from HBM in their own
    dtype and cast to f32 in VMEM; pred_ns, gt_ns: (B,) ints.  binary_gt=True
    asserts gt holds only exact 0/1 values (auto-enabled for int/bool gt).
    """
    B, N, M = pred_perm.shape
    pred_ns = pred_ns.astype(jnp.int32)
    gt_ns = gt_ns.astype(jnp.int32)
    if binary_gt is None:
        binary_gt = bool(jnp.issubdtype(gt_perm.dtype, jnp.integer)
                         or gt_perm.dtype == jnp.bool_)

    # Range / NaN check -> one scalar `scale`.  Under jit these reductions
    # fuse into a single pass over pred; the rescaled pred is never written
    # back to HBM (the kernel multiplies by `scale` after the DMA).
    in_range = jnp.all((pred_perm >= 0) & (pred_perm <= 1))
    has_nan = jnp.any(jnp.isnan(pred_perm))
    do_norm = jnp.logical_and(jnp.logical_not(in_range),
                              jnp.logical_not(has_nan))
    denom = jnp.where(do_norm, jnp.max(pred_perm).astype(jnp.float32),
                      jnp.float32(1.0))
    scale = (jnp.float32(1.0) / denom).reshape(1, 1)
    # TODO(synk): the data-dependent torch asserts on the [0,1] ranges cannot
    # be raised from inside a jitted Pallas kernel; they are omitted.

    # Lane-dense flatten only -- no padded HBM copies of the big tensors.
    NM = N * M
    pred2 = pred_perm.reshape(B, NM)
    gt2 = gt_perm.reshape(B, NM)
    w2 = weights.reshape(B, NM)

    # Flattened row/col indices, computed once (tiny constant blocks).
    cols = jnp.arange(NM, dtype=jnp.int32)
    r_idx = (cols // M).reshape(1, NM)
    c_idx = (cols % M).reshape(1, NM)

    # Generation-aware VMEM budget: double-buffered input streams plus ~32 B
    # of f32 intermediates per block element.
    try:
        vmem_cap = pltpu.get_tpu_info().vmem_capacity_bytes
    except Exception:
        vmem_cap = 64 * 1024 * 1024              # conservative (v7x-sized)
    if vmem_cap >= 96 * 1024 * 1024:             # v5e / v6e: 128 MiB physical
        input_budget, vmem_limit = 24 * 1024 * 1024, 80 * 1024 * 1024
    else:                                        # v7x: 64 MiB physical
        input_budget, vmem_limit = 10 * 1024 * 1024, 40 * 1024 * 1024
    itemsum = (pred2.dtype.itemsize + gt2.dtype.itemsize + w2.dtype.itemsize)
    bytes_per_row = NM * (2 * itemsum + 32)
    max_bt = max(1, input_budget // bytes_per_row)
    sub32 = min(pred2.dtype.itemsize, gt2.dtype.itemsize,
                w2.dtype.itemsize) < 4
    Bt, need_pad = _pick_bt(B, max_bt, 32 if sub32 else 8)

    if need_pad:
        # Rare fallback; padded rows are masked out via ns = -1 -> n_rows = 0.
        B_pad = ((B + Bt - 1) // Bt) * Bt
        pad = B_pad - B
        pred2 = jnp.pad(pred2, ((0, pad), (0, 0)))
        gt2 = jnp.pad(gt2, ((0, pad), (0, 0)))
        w2 = jnp.pad(w2, ((0, pad), (0, 0)))
        pred_ns_k = jnp.pad(pred_ns, (0, pad), constant_values=-1)
        gt_ns_k = jnp.pad(gt_ns, (0, pad), constant_values=-1)
    else:
        B_pad, pred_ns_k, gt_ns_k = B, pred_ns, gt_ns
    pred_ns2 = pred_ns_k.reshape(B_pad, 1)
    gt_ns2 = gt_ns_k.reshape(B_pad, 1)

    # Outer "parallel" axis shards batch tiles across TensorCores (2 on v7x;
    # a no-op on single-TC v5e/v6e).  Inner "arbitrary" axis accumulates into
    # the per-core resident (1, 1, 128) partial block.
    num_tiles = B_pad // Bt
    P = 2 if (num_tiles % 2 == 0 and num_tiles >= 2) else 1
    S = num_tiles // P

    tile_map = lambda p, i: (p * S + i, 0)
    const_map = lambda p, i: (0, 0)

    grid_spec = pltpu.PrefetchScalarGridSpec(
        num_scalar_prefetch=0,
        grid=(P, S),
        in_specs=[
            pl.BlockSpec(memory_space=pltpu.MemorySpace.SMEM),   # scale
            pl.BlockSpec((1, NM), const_map),                    # r_idx
            pl.BlockSpec((1, NM), const_map),                    # c_idx
            pl.BlockSpec((Bt, 1), tile_map),                     # pred_ns
            pl.BlockSpec((Bt, 1), tile_map),                     # gt_ns
            pl.BlockSpec((Bt, NM), tile_map),                    # pred
            pl.BlockSpec((Bt, NM), tile_map),                    # gt
            pl.BlockSpec((Bt, NM), tile_map),                    # weights
        ],
        out_specs=pl.BlockSpec((1, 1, 128), lambda p, i: (p, 0, 0)),
    )

    partial = pl.pallas_call(
        functools.partial(_bce_perm_kernel, binary_gt=binary_gt),
        out_shape=jax.ShapeDtypeStruct((P, 1, 128), jnp.float32),
        grid_spec=grid_spec,
        compiler_params=pltpu.CompilerParams(
            dimension_semantics=("parallel", "arbitrary"),
            vmem_limit_bytes=vmem_limit),
    )(scale, r_idx, c_idx, pred_ns2, gt_ns2, pred2, gt2, w2)

    n_sum = jnp.sum(pred_ns + 1).astype(jnp.float32)
    return jnp.sum(partial) / n_sum


def _reference(pred_perm, gt_perm, pred_ns, gt_ns, weights):
    """Pure-JAX reference mirroring the PyTorch loop."""
    pred = pred_perm.astype(jnp.float32)
    B = pred.shape[0]
    loss = 0.0
    n_sum = 0.0
    for b in range(B):
        nr = int(pred_ns[b]) + 1
        nc = int(gt_ns[b]) + 1
        p = pred[b, :nr, :nc]
        g = gt_perm[b, :nr, :nc].astype(jnp.float32)
        w = weights[b, :nr, :nc].astype(jnp.float32)
        log_p = jnp.maximum(jnp.log(p), -100.0)
        log_1mp = jnp.maximum(jnp.log(1.0 - p), -100.0)
        loss = loss + jnp.sum(-w * (g * log_p + (1.0 - g) * log_1mp))
        n_sum = n_sum + nr
    return loss / n_sum


if __name__ == "__main__":
    B, N, M = 2, 16, 16
    key = jax.random.PRNGKey(0)
    k1, k2, k3 = jax.random.split(key, 3)

    # Predicted (doubly-stochastic-like) matrix with values strictly in (0,1).
    pred_perm = jax.random.uniform(k1, (B, N, M), jnp.float32) * 0.98 + 0.01

    # Ground-truth permutation matrices, streamed as bf16 (exact 0/1 values;
    # narrower HBM dtype -> less bandwidth; the kernel casts to f32 in VMEM).
    perm_idx = jnp.stack([jax.random.permutation(k2, M),
                          jax.random.permutation(k3, M)], axis=0)
    gt_perm = jax.nn.one_hot(perm_idx, M, dtype=jnp.bfloat16)    # (B, N, M)

    # Per-element weights, also streamed narrow (bf16; exactly representable
    # values are irrelevant -- reference and kernel see the same bf16 inputs).
    weights = (jax.random.uniform(jax.random.fold_in(key, 7),
                                  (B, N, M), jnp.float32) + 0.5
               ).astype(jnp.bfloat16)

    pred_ns = jnp.array([5, 7], dtype=jnp.int32)
    gt_ns = jnp.array([5, 7], dtype=jnp.int32)

    loss_fn = jax.jit(cross_entropy_perm_loss, static_argnames=("binary_gt",))
    loss = loss_fn(pred_perm, gt_perm, pred_ns, gt_ns, weights, binary_gt=True)
    loss = jax.block_until_ready(loss)

    ref = _reference(pred_perm, gt_perm, pred_ns, gt_ns, weights)
    assert jnp.allclose(loss, ref, rtol=1e-5, atol=1e-5), (loss, ref)
    print("KERNEL_OK")
</pallas_src>

<mosaic_0001>
module attributes {stable_mosaic.version = 11 : i64} {
  func.func @_bce_perm_kernel(%arg0: i32, %arg1: i32, %arg2: memref<1x1xf32, #tpu.memory_space<smem>>, %arg3: memref<1x256xi32, #tpu.memory_space<vmem>>, %arg4: memref<1x256xi32, #tpu.memory_space<vmem>>, %arg5: memref<2x1xi32, #tpu.memory_space<vmem>>, %arg6: memref<2x1xi32, #tpu.memory_space<vmem>>, %arg7: memref<2x256xf32, #tpu.memory_space<vmem>>, %arg8: memref<2x256xbf16, #tpu.memory_space<vmem>>, %arg9: memref<2x256xbf16, #tpu.memory_space<vmem>>, %arg10: memref<1x1x128xf32, #tpu.memory_space<vmem>>) attributes {dimension_semantics = [#tpu.dimension_semantics<parallel>, #tpu.dimension_semantics<arbitrary>], iteration_bounds = array<i64: 1, 1>, scalar_prefetch = 0 : i64, scratch_operands = 0 : i64, tpu.core_type = #tpu.core_type<tc>, window_params = [{transform_indices = @transform_0, window_bounds = array<i64: 1, 1>}, {pipeline_mode = #tpu.pipeline_mode<synchronous>, transform_indices = @transform_1, window_bounds = array<i64: 1, 256>}, {pipeline_mode = #tpu.pipeline_mode<synchronous>, transform_indices = @transform_2, window_bounds = array<i64: 1, 256>}, {transform_indices = @transform_3, window_bounds = array<i64: 2, 1>}, {transform_indices = @transform_4, window_bounds = array<i64: 2, 1>}, {transform_indices = @transform_5, window_bounds = array<i64: 2, 256>}, {transform_indices = @transform_6, window_bounds = array<i64: 2, 256>}, {transform_indices = @transform_7, window_bounds = array<i64: 2, 256>}, {transform_indices = @transform_8, window_bounds = array<i64: 1, 1, 128>}]} {
    %c0_i32 = arith.constant 0 : i32
    %0 = arith.cmpi eq, %arg1, %c0_i32 : i32
    %1 = arith.extui %0 : i1 to i32
    %c0_i32_0 = arith.constant 0 : i32
    %2 = arith.cmpi ne, %1, %c0_i32_0 : i32
    scf.if %2 {
      %cst_28 = arith.constant 0.000000e+00 : f32
      %48 = vector.broadcast %cst_28 : f32 to vector<1x1x128xf32>
      %c0_29 = arith.constant 0 : index
      %c0_30 = arith.constant 0 : index
      %c0_31 = arith.constant 0 : index
      %49 = vector.load %arg10[%c0_29, %c0_30, %c0_31] : memref<1x1x128xf32, #tpu.memory_space<vmem>>, vector<1x1x128xf32>
      tpu.vector_store %arg10[%c0_29, %c0_30, %c0_31], %48 {strides = array<i32>} : memref<1x1x128xf32, #tpu.memory_space<vmem>>, vector<1x1x128xf32>,
    } else {
    }
    %c0 = arith.constant 0 : index
    %c0_1 = arith.constant 0 : index
    %3 = vector.load %arg5[%c0, %c0_1] : memref<2x1xi32, #tpu.memory_space<vmem>>, vector<2x1xi32>
    %c1_i32 = arith.constant 1 : i32
    %4 = vector.broadcast %c1_i32 : i32 to vector<2x1xi32>
    %5 = arith.addi %3, %4 : vector<2x1xi32>
    %c0_2 = arith.constant 0 : index
    %c0_3 = arith.constant 0 : index
    %6 = vector.load %arg6[%c0_2, %c0_3] : memref<2x1xi32, #tpu.memory_space<vmem>>, vector<2x1xi32>
    %c1_i32_4 = arith.constant 1 : i32
    %7 = vector.broadcast %c1_i32_4 : i32 to vector<2x1xi32>
    %8 = arith.addi %6, %7 : vector<2x1xi32>
    %c0_5 = arith.constant 0 : index
    %c0_6 = arith.constant 0 : index
    %9 = vector.load %arg3[%c0_5, %c0_6] : memref<1x256xi32, #tpu.memory_space<vmem>>, vector<1x256xi32>
    %10 = vector.broadcast %9 : vector<1x256xi32> to vector<2x256xi32>
    %11 = vector.broadcast %5 : vector<2x1xi32> to vector<2x256xi32>
    %12 = arith.cmpi slt, %10, %11 : vector<2x256xi32>
    %c0_7 = arith.constant 0 : index
    %c0_8 = arith.constant 0 : index
    %13 = vector.load %arg4[%c0_7, %c0_8] : memref<1x256xi32, #tpu.memory_space<vmem>>, vector<1x256xi32>
    %14 = vector.broadcast %13 : vector<1x256xi32> to vector<2x256xi32>
    %15 = vector.broadcast %8 : vector<2x1xi32> to vector<2x256xi32>
    %16 = arith.cmpi slt, %14, %15 : vector<2x256xi32>
    %17 = arith.andi %12, %16 : vector<2x256xi1>
    %c0_9 = arith.constant 0 : index
    %c0_10 = arith.constant 0 : index
    %18 = memref.load %arg2[%c0_9, %c0_10] : memref<1x1xf32, #tpu.memory_space<smem>>
    %c0_11 = arith.constant 0 : index
    %c0_12 = arith.constant 0 : index
    %19 = vector.load %arg7[%c0_11, %c0_12] : memref<2x256xf32, #tpu.memory_space<vmem>>, vector<2x256xf32>
    %20 = vector.broadcast %18 : f32 to vector<2x256xf32>
    %21 = arith.mulf %19, %20 : vector<2x256xf32>
    %c0_13 = arith.constant 0 : index
    %c0_14 = arith.constant 0 : index
    %22 = vector.load %arg8[%c0_13, %c0_14] : memref<2x256xbf16, #tpu.memory_space<vmem>>, vector<2x256xbf16>
    %23 = arith.extf %22 : vector<2x256xbf16> to vector<2x256xf32>
    %c0_15 = arith.constant 0 : index
    %c0_16 = arith.constant 0 : index
    %24 = vector.load %arg9[%c0_15, %c0_16] : memref<2x256xbf16, #tpu.memory_space<vmem>>, vector<2x256xbf16>
    %25 = arith.extf %24 : vector<2x256xbf16> to vector<2x256xf32>
    %cst = arith.constant 0.000000e+00 : f32
    %26 = vector.broadcast %cst : f32 to vector<2x256xf32>
    %27 = arith.cmpf one, %23, %26 : vector<2x256xf32>
    %cst_17 = arith.constant 1.000000e+00 : f32
    %28 = vector.broadcast %cst_17 : f32 to vector<2x256xf32>
    %29 = arith.subf %28, %21 : vector<2x256xf32>
    %30 = arith.select %27, %21, %29 : vector<2x256xi1>, vector<2x256xf32>
    %cst_18 = arith.constant 0.000000e+00 : f32
    %31 = vector.broadcast %cst_18 : f32 to vector<2x256xf32>
    %32 = arith.subf %31, %25 : vector<2x256xf32>
    %33 = math.log %30 : vector<2x256xf32>
    %cst_19 = arith.constant -1.000000e+02 : f32
    %34 = vector.broadcast %cst_19 : f32 to vector<2x256xf32>
    %35 = arith.maximumf %33, %34 : vector<2x256xf32>
    %36 = arith.mulf %32, %35 : vector<2x256xf32>
    %cst_20 = arith.constant 0.000000e+00 : f32
    %37 = vector.broadcast %cst_20 : f32 to vector<2x256xf32>
    %38 = arith.select %17, %36, %37 : vector<2x256xi1>, vector<2x256xf32>
    %39 = vector.extract_strided_slice %38 {offsets = [0, 0], sizes = [2, 128], strides = [1, 1]} : vector<2x256xf32> to vector<2x128xf32>
    %40 = vector.extract_strided_slice %38 {offsets = [0, 128], sizes = [2, 128], strides = [1, 1]} : vector<2x256xf32> to vector<2x128xf32>
    %41 = arith.addf %39, %40 : vector<2x128xf32>
    %cst_21 = arith.constant dense<0.000000e+00> : vector<128xf32>
    %42 = vector.multi_reduction <add>, %41, %cst_21 [0] : vector<2x128xf32> to vector<128xf32>
    %43 = vector.shape_cast %42 : vector<128xf32> to vector<1x128xf32>
    %c0_22 = arith.constant 0 : index
    %c0_23 = arith.constant 0 : index
    %c0_24 = arith.constant 0 : index
    %44 = vector.load %arg10[%c0_22, %c0_23, %c0_24] : memref<1x1x128xf32, #tpu.memory_space<vmem>>, vector<1x1x128xf32>
    %45 = vector.shape_cast %43 : vector<1x128xf32> to vector<1x1x128xf32>
    %46 = arith.addf %44, %45 : vector<1x1x128xf32>
    %c0_25 = arith.constant 0 : index
    %c0_26 = arith.constant 0 : index
    %c0_27 = arith.constant 0 : index
    %47 = vector.load %arg10[%c0_25, %c0_26, %c0_27] : memref<1x1x128xf32, #tpu.memory_space<vmem>>, vector<1x1x128xf32>
    tpu.vector_store %arg10[%c0_25, %c0_26, %c0_27], %46 {strides = array<i32>} : memref<1x1x128xf32, #tpu.memory_space<vmem>>, vector<1x1x128xf32>,
    return
  }
  func.func @transform_0(%arg0: i32, %arg1: i32) -> (i32, i32) {
    %c0_i32 = arith.constant 0 : i32
    %c0_i32_0 = arith.constant 0 : i32
    %c0_i32_1 = arith.constant 0 : i32
    return %c0_i32, %c0_i32_0 : i32, i32
  }
  func.func @transform_1(%arg0: i32, %arg1: i32) -> (i32, i32) {
    %c0_i32 = arith.constant 0 : i32
    %c0_i32_0 = arith.constant 0 : i32
    %c0_i32_1 = arith.constant 0 : i32
    return %c0_i32, %c0_i32_0 : i32, i32
  }
  func.func @transform_2(%arg0: i32, %arg1: i32) -> (i32, i32) {
    %c0_i32 = arith.constant 0 : i32
    %c0_i32_0 = arith.constant 0 : i32
    %c0_i32_1 = arith.constant 0 : i32
    return %c0_i32, %c0_i32_0 : i32, i32
  }
  func.func @transform_3(%arg0: i32, %arg1: i32) -> (i32, i32) {
    %c1_i32 = arith.constant 1 : i32
    %0 = arith.muli %arg0, %c1_i32 : i32
    %1 = arith.addi %0, %arg1 : i32
    %c0_i32 = arith.constant 0 : i32
    %c0_i32_0 = arith.constant 0 : i32
    return %1, %c0_i32 : i32, i32
  }
  func.func @transform_4(%arg0: i32, %arg1: i32) -> (i32, i32) {
    %c1_i32 = arith.constant 1 : i32
    %0 = arith.muli %arg0, %c1_i32 : i32
    %1 = arith.addi %0, %arg1 : i32
    %c0_i32 = arith.constant 0 : i32
    %c0_i32_0 = arith.constant 0 : i32
    return %1, %c0_i32 : i32, i32
  }
  func.func @transform_5(%arg0: i32, %arg1: i32) -> (i32, i32) {
    %c1_i32 = arith.constant 1 : i32
    %0 = arith.muli %arg0, %c1_i32 : i32
    %1 = arith.addi %0, %arg1 : i32
    %c0_i32 = arith.constant 0 : i32
    %c0_i32_0 = arith.constant 0 : i32
    return %1, %c0_i32 : i32, i32
  }
  func.func @transform_6(%arg0: i32, %arg1: i32) -> (i32, i32) {
    %c1_i32 = arith.constant 1 : i32
    %0 = arith.muli %arg0, %c1_i32 : i32
    %1 = arith.addi %0, %arg1 : i32
    %c0_i32 = arith.constant 0 : i32
    %c0_i32_0 = arith.constant 0 : i32
    return %1, %c0_i32 : i32, i32
  }
  func.func @transform_7(%arg0: i32, %arg1: i32) -> (i32, i32) {
    %c1_i32 = arith.constant 1 : i32
    %0 = arith.muli %arg0, %c1_i32 : i32
    %1 = arith.addi %0, %arg1 : i32
    %c0_i32 = arith.constant 0 : i32
    %c0_i32_0 = arith.constant 0 : i32
    return %1, %c0_i32 : i32, i32
  }
  func.func @transform_8(%arg0: i32, %arg1: i32) -> (i32, i32, i32) {
    %c0_i32 = arith.constant 0 : i32
    %c0_i32_0 = arith.constant 0 : i32
    %c0_i32_1 = arith.constant 0 : i32
    return %arg0, %c0_i32, %c0_i32_0 : i32, i32, i32
  }
}

</mosaic_0001>

<bundles_post_ra>
// kernel: cross_entropy_perm_loss.1
= control target key start
LH: loop header
LB: loop body
LE: loop exit
PB: predicated region body
PF: predicated region fallthrough
CT: control target
= control target key end

     0   :  { %v238_v0 = vmov 0   ;;  %v239_v3 = vmov 0.0   ;;  %v240_v16 = vmov 1983009808   ;;  %v128_v19 = vlaneseq  ;;  %s319_s3 = inlined_call_operand.vmem [shape: s32[2,1], index: 3, kind: input, shape index: {}]   ;;  %s320_s4 = inlined_call_operand.vmem [shape: s32[2,1], index: 4, kind: input, shape index: {}]   ;;  %s321_s8 = inlined_call_operand.vmem [shape: f32[1,1,128], index: 8, kind: output, shape index: {}]   ;;  %s322_s5 = inlined_call_operand.vmem [shape: f32[2,256], index: 5, kind: input, shape index: {}]   ;;  %s323_s0 = inlined_call_operand.<no memory space> [shape: f32[1,1], index: 0, kind: input, shape index: {}]   ;;  %s324_s6 = inlined_call_operand.vmem [shape: bf16[2,256], index: 6, kind: input, shape index: {}]   ;;  %s325_s7 = inlined_call_operand.vmem [shape: bf16[2,256], index: 7, kind: input, shape index: {}]   ;;  %s326_s1 = inlined_call_operand.vmem [shape: s32[1,256], index: 1, kind: input, shape index: {}]   ;;  %s327_s2 = inlined_call_operand.vmem [shape: s32[1,256], index: 2, kind: input, shape index: {}]  }
   0x1   :  { %235 = vset.pattern.permute.xlu0 %v238_v0  ;;  %v123_v1 = vld [vmem:[%s319_s3] sm:$0x3]  ;;  %122 = vst [vmem:[%s321_s8] sm:$0x1] %v239_v3  ;;  %v159_v7 = vstv %s323_s0  ;;  %v175_v17 = vunpack.c.l.s4 %v240_v16  ;;  %vm187_vm7 = vcmask 1041408  }
   0x2   :  { %v125_v2 = vld [vmem:[%s320_s4] sm:$0x3]  ;;  %v124_v4 = vadd.s32 1, %v123_v1  ;;  %v129_v23 = vshrl.u32 %v128_v19, 7 }
   0x3   :  { %v126_v5 = vadd.s32 1, %v125_v2  ;;  %v158_v6 = vld [vmem:[%s322_s5] sm:$0xf]  ;;  %v176_v21 = vunpack.c.0.s8 %v175_v17 }
   0x4   :  { %137 = vperm.xlu0 %235, %v124_v4   ;;  %v161_v8 = vld [vmem:[%s324_s6] sm:$0x3]  ;;  %v160_v9 = vmul.f32 %v159_v7, %v158_v6  ;;  %v130_v26 = vsub.s32 0, %v129_v23  ;;  %v134_v27 = vsub.s32 1, %v129_v23 }
   0x5   :  { %v162_v10 = vunpack.c.l.bf16 %v161_v8  ;;  %v163_v14 = vld [vmem:[%s325_s7] sm:$0x3]  ;;  %v179_v24 = vsub.s32 %v176_v21, %v129_v23 }
   0x6   :  { %v166_v11 = vsub.f32 1.0, %v160_v9  ;;  %v164_v15 = vunpack.c.l.bf16 %v163_v14  ;;  %v127_v28 = vld [vmem:[%s326_s1] sm:$0x3] }
   0x7   :  { %vm165_vm0 = vcmp.ne.f32.partialorder %v162_v10, 0.0  ;;  %v141_v29 = vld [vmem:[%s327_s2] sm:$0x3]  ;;  %v131_v32 = vrot.slane %v127_v28, %v130_v26  ;;  %v135_v35 = vrot.slane %v127_v28, %v134_v27 }
   0x8   :  { %151 = vperm.xlu0 %235, %v126_v5   ;;  %v167_v12 = vsel %vm165_vm0, %v160_v9, %v166_v11  ;;  %v168_v20 = vsub.f32 0.0, %v164_v15  ;;  %v145_v33 = vrot.slane %v141_v29, %v130_v26  ;;  %v149_v34 = vrot.slane %v141_v29, %v134_v27  ;;  %v195_v47 = vld [vmem:[%s321_s8] sm:$0x1] }
   0x9   :  { %236 = vlog2.f32 %v167_v12 }
  0x16   :  { %v237_v13 = vpop.eup %236 }
  0x17   :  { %v170_v18 = vmul.f32 0.6931472, %v237_v13 }
  0x19   :  { %v171_v22 = vmax.f32 %v170_v18, -100.0 }
  0x1b   :  { %v172_v25 = vmul.f32 %v171_v22, %v168_v20 }
  0x1d   :  { %v180_v31 = vrot.slane %v172_v25, %v179_v24 }
  0x1f   :  { %v181_v37 = vcombine.high %v180_v31, %v180_v31 }
  0x7f   :  { %v138_v30 = vpop.permute.xlu0 %137 }
  0x80   :  { %vm139_vm1 = vcmp.lt.s32.totalorder %v131_v32, %v138_v30  ;;  %vm140_vm4 = vcmp.lt.s32.totalorder %v135_v35, %v138_v30 }
  0x83   :  { %v152_v36 = vpop.permute.xlu0 %151 }
  0x84   :  { %vm153_vm2 = vcmp.lt.s32.totalorder %v145_v33, %v152_v36  ;;  %vm154_vm3 = vcmp.lt.s32.totalorder %v149_v34, %v152_v36 }
  0x85   :  { %vm155_vm5 = vmand %vm139_vm1, %vm153_vm2 }
  0x86   :  { %vm156_vm6 = vmand %vm140_vm4, %vm154_vm3  ;;  %v184_v38 = vsel %vm155_vm5, %v180_v31, 0.0 }
  0x87   :  { %v185_v39 = vsel %vm156_vm6, %v181_v37, 0.0 }
  0x88   :  { %v186_v40 = vadd.f32 %v185_v39, %v184_v38 }
  0x8a   :  { %v188_v41 = vsel %vm187_vm7, %v186_v40, 0.0 }
  0x8b   :  { %v189_v42 = vrot.slane %v188_v41, 4 }
  0x8d   :  { %v190_v43 = vadd.f32 %v189_v42, %v188_v41 }
  0x8f   :  { %v191_v44 = vrot.slane %v190_v43, 2 }
  0x91   :  { %v192_v45 = vadd.f32 %v191_v44, %v190_v43 }
  0x93   :  { %v193_v46 = vrot.slane %v192_v45, 1 }
  0x95   :  { %v194_v48 = vadd.f32 %v193_v46, %v192_v45 }
  0x97   :  { %v196_v49 = vadd.f32 %v195_v47, %v194_v48 }
  0x99   :  { %197 = vst [vmem:[%s321_s8] sm:$0x1] %v196_v49 }

</bundles_post_ra>
